<compile_context>
chip_gen: v6e
topology: v6e:2x2x1
jax: 0.10.0
libtpu: 0.0.40
codegen_flags: <defaults>
</compile_context>

<pallas_src>
import functools
import math

import jax
import jax.numpy as jnp
from jax import lax
from jax.experimental import pallas as pl
from jax.experimental.pallas import tpu as pltpu


NEG_SLOPE = 0.2
_LANE = 128
_VMEM_TILE_BUDGET = 12 * 1024 * 1024   # conservative: fits v5e's 16 MiB scoped default
_VMEM_LIMIT_BYTES = 32 * 1024 * 1024   # explicit scoped limit, <= every gen's physical
_SMALL_WEIGHT_BYTES = 2 * 1024 * 1024  # below this, keep the whole weight VMEM-resident


def _round_up(x, m):
    return (x + m - 1) // m * m


def _sublane_multiple(dtype):
    # f32 -> 8 rows/sublane-tile, bf16 -> 16, int8/fp8 -> 32.
    return {2: 16, 1: 32}.get(jnp.dtype(dtype).itemsize, 8)


# ---------------------------------------------------------------------------
# Pallas kernel: one (tm, K) x (K, tn) tile of  patches @ W + b  + LeakyReLU.
# f32 MXU accumulation; bias + LeakyReLU in f32; cast on store.
# ---------------------------------------------------------------------------
def _conv_block_kernel(p_ref, w_ref, b_ref, o_ref, *, negative_slope):
    acc = jnp.dot(p_ref[...], w_ref[...], preferred_element_type=jnp.float32)
    acc = acc + b_ref[...]                                     # f32 epilogue
    o_ref[...] = jnp.where(acc >= 0.0, acc, negative_slope * acc).astype(o_ref.dtype)


def _select_tiles(M, K, Np, in_isz, w_isz, out_isz, sub_mult):
    """Pick (tm, tn) under a conservative VMEM budget, dtype-aware."""
    # Weight tile: keep the whole (K, Np) weight resident when it is small so it
    # is fetched exactly once for the whole grid (constant block index).
    if K * Np * w_isz <= _SMALL_WEIGHT_BYTES:
        tn = Np
    else:
        tn = min(Np, 256)

    # Row-tile cap from the VMEM budget (double-buffered patches/out + weight + bias).
    fixed = 2 * (K * tn * w_isz + tn * 4)
    avail = _VMEM_TILE_BUDGET - fixed
    if avail <= 0 and tn > _LANE:
        tn = _LANE
        fixed = 2 * (K * tn * w_isz + tn * 4)
        avail = _VMEM_TILE_BUDGET - fixed
    per_row = 2 * (K * in_isz + tn * out_isz)
    tm_cap = avail // per_row if avail > 0 else sub_mult
    tm_cap = max(sub_mult, min(512, tm_cap // sub_mult * sub_mult))

    # Row tile: keep M-padding small; when M is large enough, force >=2 grid
    # steps so v7x's two TensorCores both get work (negligible cost elsewhere).
    Ms = _round_up(M, sub_mult)
    n_steps = -(-Ms // tm_cap)
    if Ms >= 8 * sub_mult:
        n_steps = max(n_steps, 2)
    tm = min(Ms, _round_up(-(-Ms // n_steps), sub_mult))
    return tm, tn


def conv2d_leakyrelu_nhwc(x_nhwc, layer, compute_dtype, out_dtype):
    """One Block_Conv on NHWC activations via im2col + tiled Pallas matmul."""
    B, H, W, C_in = x_nhwc.shape
    k = layer["kernel_size"]
    stride = layer["stride"]
    pad = layer["padding"]
    C_out = layer["channels"]
    H_out = (H + 2 * pad - k) // stride + 1
    W_out = (W + 2 * pad - k) // stride + 1

    K = C_in * k * k
    M = B * H_out * W_out

    # im2col directly in compute_dtype (no f32 patch materialization, no extra
    # cast pass).  Feature ordering is (c_in, kh, kw), which matches PyTorch's
    # weight.reshape(C_out, -1); NHWC layout means no transpose needed.
    patches = lax.conv_general_dilated_patches(
        x_nhwc.astype(compute_dtype),
        filter_shape=(k, k),
        window_strides=(stride, stride),
        padding=[(pad, pad), (pad, pad)],
        dimension_numbers=("NHWC", "HWIO", "NHWC"),
    ).reshape(M, K)

    # Pre-packed, lane-padded kernel operands (cast done at init for the
    # default compute dtype; f32 path uses the f32 pack directly).
    w_lp = layer["w_pack_lp"]
    if w_lp.dtype == jnp.dtype(compute_dtype):
        w = w_lp
    elif jnp.dtype(compute_dtype) == jnp.float32:
        w = layer["w_pack"]
    else:
        w = layer["w_pack"].astype(compute_dtype)
    b = layer["b_pack"]                                   # f32, shape (1, Np)
    Np = w.shape[1]

    in_isz = jnp.dtype(compute_dtype).itemsize
    out_isz = jnp.dtype(out_dtype).itemsize
    sub = _sublane_multiple(compute_dtype)
    tm, tn = _select_tiles(M, K, Np, in_isz, in_isz, out_isz, sub)

    Mp = _round_up(M, tm)
    if Mp != M:  # only the row (M) axis is padded; K keeps its true size.
        patches = jnp.pad(patches, ((0, Mp - M), (0, 0)))

    cost = pl.CostEstimate(
        flops=2 * Mp * K * Np,
        transcendentals=0,
        bytes_accessed=Mp * K * in_isz + K * Np * in_isz + Np * 4 + Mp * Np * out_isz,
    )

    kernel = functools.partial(_conv_block_kernel, negative_slope=NEG_SLOPE)
    out_p = pl.pallas_call(
        kernel,
        out_shape=jax.ShapeDtypeStruct((Mp, Np), out_dtype),
        grid=(Mp // tm, Np // tn),
        in_specs=[
            pl.BlockSpec((tm, K), lambda i, j: (i, 0)),   # K = full-extent block dim
            pl.BlockSpec((K, tn), lambda i, j: (0, j)),   # (0, 0) whole grid when tn == Np
            pl.BlockSpec((1, tn), lambda i, j: (0, j)),
        ],
        out_specs=pl.BlockSpec((tm, tn), lambda i, j: (i, j)),
        compiler_params=pltpu.CompilerParams(
            dimension_semantics=("parallel", "parallel"),
            vmem_limit_bytes=_VMEM_LIMIT_BYTES),
        cost_estimate=cost,
    )(patches, w, b)

    return out_p[:M, :C_out].reshape(B, H_out, W_out, C_out)  # NHWC for next block


# ---------------------------------------------------------------------------
# Discriminator: parameter init + forward (mirrors the nn.Sequential of blocks)
# ---------------------------------------------------------------------------
def init_discriminator_params(key, discriminator_info, pack_dtype=jnp.bfloat16):
    params = []
    in_ch = discriminator_info["num_input_ch"]
    for block_info in discriminator_info["block_info"]:
        conv_info = block_info["conv_info"]
        out_ch = conv_info["channels"]
        k = conv_info["kernel_size"]
        key, kw, kb = jax.random.split(key, 3)
        fan_in = in_ch * k * k
        bound = 1.0 / math.sqrt(fan_in)                  # PyTorch-style uniform bound
        w = jax.random.uniform(kw, (out_ch, in_ch, k, k), jnp.float32,
                               minval=-bound, maxval=bound)
        b = jax.random.uniform(kb, (out_ch,), jnp.float32,
                               minval=-bound, maxval=bound)

        # Pre-pack matmul operands ONCE (tiny): [K, Np] weight and [1, Np] bias,
        # N padded to a 128-lane multiple (lane-dense, unmasked output stores).
        # The low-precision copy is cast here so the hot path has no cast op.
        K = in_ch * k * k
        Np = _round_up(out_ch, _LANE)
        w_mat = w.reshape(out_ch, K).T
        w_pack = jnp.zeros((K, Np), jnp.float32).at[:, :out_ch].set(w_mat)
        b_pack = jnp.zeros((1, Np), jnp.float32).at[:, :out_ch].set(b)

        params.append({
            "weight": w, "bias": b,                      # PyTorch-layout (reference)
            "w_pack": w_pack,                            # f32 packed operand
            "w_pack_lp": w_pack.astype(pack_dtype),      # pre-cast packed operand
            "b_pack": b_pack,                            # f32 bias (epilogue stays f32)
            "channels": out_ch, "kernel_size": k,
            "stride": conv_info["stride"], "padding": conv_info["padding"],
        })
        in_ch = out_ch
    return params


def discriminator_forward(params, inputs, compute_dtype=jnp.bfloat16):
    x = inputs["x"] if isinstance(inputs, dict) else inputs   # PyTorch wrapper semantics
    # NCHW -> NHWC and cast ONCE; activations then stay NHWC / compute_dtype.
    x = jnp.transpose(x, (0, 2, 3, 1)).astype(compute_dtype)
    n_blocks = len(params)
    for idx, layer in enumerate(params):
        out_dtype = jnp.float32 if idx == n_blocks - 1 else compute_dtype
        x = conv2d_leakyrelu_nhwc(x, layer, compute_dtype, out_dtype)
    return jnp.transpose(x, (0, 3, 1, 2))                     # back to NCHW (f32) at boundary


def discriminator_reference(params, x, compute_dtype=jnp.float32):
    """Pure-JAX reference (lax conv, f32 accumulation) for correctness checking."""
    for p in params:
        y = lax.conv_general_dilated(
            x.astype(compute_dtype), p["weight"].astype(compute_dtype),
            window_strides=(p["stride"], p["stride"]),
            padding=[(p["padding"], p["padding"])] * 2,
            dimension_numbers=("NCHW", "OIHW", "NCHW"),
            preferred_element_type=jnp.float32,
        ) + p["bias"].reshape(1, -1, 1, 1)
        x = jnp.where(y >= 0.0, y, NEG_SLOPE * y)
    return x


if __name__ == "__main__":
    discriminator_info = {
        "num_input_ch": 4,
        "block_info": [
            {"conv_info": {"channels": 8, "kernel_size": 3, "stride": 2, "padding": 1}},
            {"conv_info": {"channels": 16, "kernel_size": 3, "stride": 2, "padding": 1}},
            {"conv_info": {"channels": 1, "kernel_size": 3, "stride": 1, "padding": 1}},
        ],
    }

    key = jax.random.PRNGKey(0)
    params = init_discriminator_params(key, discriminator_info)
    x = jax.random.normal(jax.random.fold_in(key, 999), (2, 4, 16, 16), jnp.float32)

    # Default fast path: bf16 patches/weights/activations, f32 MXU accumulation
    # + f32 epilogue inside the kernel, f32 only at the module output.
    fwd_bf16 = jax.jit(lambda xx: discriminator_forward(params, xx))
    out = jax.block_until_ready(fwd_bf16(x))
    ref_bf16 = discriminator_reference(params, x, compute_dtype=jnp.bfloat16)
    assert out.shape == ref_bf16.shape == (2, 1, 4, 4), (out.shape, ref_bf16.shape)
    assert jnp.allclose(out, ref_bf16, atol=1e-3, rtol=1e-3), \
        float(jnp.max(jnp.abs(out - ref_bf16)))

    # Full-f32 path matches the f32 reference to tight tolerance.
    fwd_f32 = jax.jit(
        lambda xx: discriminator_forward(params, xx, compute_dtype=jnp.float32))
    out_f32 = jax.block_until_ready(fwd_f32(x))
    ref_f32 = discriminator_reference(params, x, compute_dtype=jnp.float32)
    assert jnp.allclose(out_f32, ref_f32, atol=1e-4, rtol=1e-4), \
        float(jnp.max(jnp.abs(out_f32 - ref_f32)))

    print("KERNEL_OK")
</pallas_src>

<mosaic_0001>
module attributes {stable_mosaic.version = 11 : i64} {
  func.func @_conv_block_kernel(%arg0: i32, %arg1: i32, %arg2: memref<64x36xbf16, #tpu.memory_space<vmem>>, %arg3: memref<36x128xbf16, #tpu.memory_space<vmem>>, %arg4: memref<1x128xf32, #tpu.memory_space<vmem>>, %arg5: memref<64x128xbf16, #tpu.memory_space<vmem>>) attributes {dimension_semantics = [#tpu.dimension_semantics<parallel>, #tpu.dimension_semantics<parallel>], iteration_bounds = array<i64: 2, 1>, scalar_prefetch = 0 : i64, scratch_operands = 0 : i64, tpu.core_type = #tpu.core_type<tc>, window_params = [{transform_indices = @transform_0, window_bounds = array<i64: 64, 36>}, {transform_indices = @transform_1, window_bounds = array<i64: 36, 128>}, {transform_indices = @transform_2, window_bounds = array<i64: 1, 128>}, {transform_indices = @transform_3, window_bounds = array<i64: 64, 128>}]} {
    %c0 = arith.constant 0 : index
    %c0_0 = arith.constant 0 : index
    %0 = vector.load %arg2[%c0, %c0_0] : memref<64x36xbf16, #tpu.memory_space<vmem>>, vector<64x36xbf16>
    %c0_1 = arith.constant 0 : index
    %c0_2 = arith.constant 0 : index
    %1 = vector.load %arg3[%c0_1, %c0_2] : memref<36x128xbf16, #tpu.memory_space<vmem>>, vector<36x128xbf16>
    %cst = arith.constant dense<0.000000e+00> : vector<64x128xf32>
    %2 = tpu.matmul %0, %1, %cst {dimension_numbers = #tpu.dot_dimension_numbers<[1], [0], [0], [1], [0, 0, 1, 1], [], []>} : vector<64x36xbf16>, vector<36x128xbf16>, vector<64x128xf32> -> vector<64x128xf32>
    %c0_3 = arith.constant 0 : index
    %c0_4 = arith.constant 0 : index
    %3 = vector.load %arg4[%c0_3, %c0_4] : memref<1x128xf32, #tpu.memory_space<vmem>>, vector<1x128xf32>
    %4 = vector.broadcast %3 : vector<1x128xf32> to vector<64x128xf32>
    %5 = arith.addf %2, %4 : vector<64x128xf32>
    %cst_5 = arith.constant 0.000000e+00 : f32
    %6 = vector.broadcast %cst_5 : f32 to vector<64x128xf32>
    %7 = arith.cmpf oge, %5, %6 : vector<64x128xf32>
    %cst_6 = arith.constant 2.000000e-01 : f32
    %8 = vector.broadcast %cst_6 : f32 to vector<64x128xf32>
    %9 = arith.mulf %8, %5 : vector<64x128xf32>
    %10 = arith.select %7, %5, %9 : vector<64x128xi1>, vector<64x128xf32>
    %11 = arith.truncf %10 : vector<64x128xf32> to vector<64x128xbf16>
    %c0_7 = arith.constant 0 : index
    %c0_8 = arith.constant 0 : index
    %12 = vector.load %arg5[%c0_7, %c0_8] : memref<64x128xbf16, #tpu.memory_space<vmem>>, vector<64x128xbf16>
    tpu.vector_store %arg5[%c0_7, %c0_8], %11 {strides = array<i32>} : memref<64x128xbf16, #tpu.memory_space<vmem>>, vector<64x128xbf16>,
    return
  }
  func.func @transform_0(%arg0: i32, %arg1: i32) -> (i32, i32) {
    %c0_i32 = arith.constant 0 : i32
    %c0_i32_0 = arith.constant 0 : i32
    return %arg0, %c0_i32 : i32, i32
  }
  func.func @transform_1(%arg0: i32, %arg1: i32) -> (i32, i32) {
    %c0_i32 = arith.constant 0 : i32
    %c0_i32_0 = arith.constant 0 : i32
    return %c0_i32, %arg1 : i32, i32
  }
  func.func @transform_2(%arg0: i32, %arg1: i32) -> (i32, i32) {
    %c0_i32 = arith.constant 0 : i32
    %c0_i32_0 = arith.constant 0 : i32
    return %c0_i32, %arg1 : i32, i32
  }
  func.func @transform_3(%arg0: i32, %arg1: i32) -> (i32, i32) {
    %c0_i32 = arith.constant 0 : i32
    return %arg0, %arg1 : i32, i32
  }
}

module attributes {stable_mosaic.version = 11 : i64} {
  func.func @_conv_block_kernel(%arg0: i32, %arg1: i32, %arg2: memref<32x72xbf16, #tpu.memory_space<vmem>>, %arg3: memref<72x128xbf16, #tpu.memory_space<vmem>>, %arg4: memref<1x128xf32, #tpu.memory_space<vmem>>, %arg5: memref<32x128xbf16, #tpu.memory_space<vmem>>) attributes {dimension_semantics = [#tpu.dimension_semantics<parallel>, #tpu.dimension_semantics<parallel>], iteration_bounds = array<i64: 1, 1>, scalar_prefetch = 0 : i64, scratch_operands = 0 : i64, tpu.core_type = #tpu.core_type<tc>, window_params = [{transform_indices = @transform_0, window_bounds = array<i64: 32, 72>}, {transform_indices = @transform_1, window_bounds = array<i64: 72, 128>}, {transform_indices = @transform_2, window_bounds = array<i64: 1, 128>}, {transform_indices = @transform_3, window_bounds = array<i64: 32, 128>}]} {
    %c0 = arith.constant 0 : index
    %c0_0 = arith.constant 0 : index
    %0 = vector.load %arg2[%c0, %c0_0] : memref<32x72xbf16, #tpu.memory_space<vmem>>, vector<32x72xbf16>
    %c0_1 = arith.constant 0 : index
    %c0_2 = arith.constant 0 : index
    %1 = vector.load %arg3[%c0_1, %c0_2] : memref<72x128xbf16, #tpu.memory_space<vmem>>, vector<72x128xbf16>
    %cst = arith.constant dense<0.000000e+00> : vector<32x128xf32>
    %2 = tpu.matmul %0, %1, %cst {dimension_numbers = #tpu.dot_dimension_numbers<[1], [0], [0], [1], [0, 0, 1, 1], [], []>} : vector<32x72xbf16>, vector<72x128xbf16>, vector<32x128xf32> -> vector<32x128xf32>
    %c0_3 = arith.constant 0 : index
    %c0_4 = arith.constant 0 : index
    %3 = vector.load %arg4[%c0_3, %c0_4] : memref<1x128xf32, #tpu.memory_space<vmem>>, vector<1x128xf32>
    %4 = vector.broadcast %3 : vector<1x128xf32> to vector<32x128xf32>
    %5 = arith.addf %2, %4 : vector<32x128xf32>
    %cst_5 = arith.constant 0.000000e+00 : f32
    %6 = vector.broadcast %cst_5 : f32 to vector<32x128xf32>
    %7 = arith.cmpf oge, %5, %6 : vector<32x128xf32>
    %cst_6 = arith.constant 2.000000e-01 : f32
    %8 = vector.broadcast %cst_6 : f32 to vector<32x128xf32>
    %9 = arith.mulf %8, %5 : vector<32x128xf32>
    %10 = arith.select %7, %5, %9 : vector<32x128xi1>, vector<32x128xf32>
    %11 = arith.truncf %10 : vector<32x128xf32> to vector<32x128xbf16>
    %c0_7 = arith.constant 0 : index
    %c0_8 = arith.constant 0 : index
    %12 = vector.load %arg5[%c0_7, %c0_8] : memref<32x128xbf16, #tpu.memory_space<vmem>>, vector<32x128xbf16>
    tpu.vector_store %arg5[%c0_7, %c0_8], %11 {strides = array<i32>} : memref<32x128xbf16, #tpu.memory_space<vmem>>, vector<32x128xbf16>,
    return
  }
  func.func @transform_0(%arg0: i32, %arg1: i32) -> (i32, i32) {
    %c0_i32 = arith.constant 0 : i32
    %c0_i32_0 = arith.constant 0 : i32
    return %arg0, %c0_i32 : i32, i32
  }
  func.func @transform_1(%arg0: i32, %arg1: i32) -> (i32, i32) {
    %c0_i32 = arith.constant 0 : i32
    %c0_i32_0 = arith.constant 0 : i32
    return %c0_i32, %arg1 : i32, i32
  }
  func.func @transform_2(%arg0: i32, %arg1: i32) -> (i32, i32) {
    %c0_i32 = arith.constant 0 : i32
    %c0_i32_0 = arith.constant 0 : i32
    return %c0_i32, %arg1 : i32, i32
  }
  func.func @transform_3(%arg0: i32, %arg1: i32) -> (i32, i32) {
    %c0_i32 = arith.constant 0 : i32
    return %arg0, %arg1 : i32, i32
  }
}

module attributes {stable_mosaic.version = 11 : i64} {
  func.func @_conv_block_kernel(%arg0: i32, %arg1: i32, %arg2: memref<32x144xbf16, #tpu.memory_space<vmem>>, %arg3: memref<144x128xbf16, #tpu.memory_space<vmem>>, %arg4: memref<1x128xf32, #tpu.memory_space<vmem>>, %arg5: memref<32x128xf32, #tpu.memory_space<vmem>>) attributes {dimension_semantics = [#tpu.dimension_semantics<parallel>, #tpu.dimension_semantics<parallel>], iteration_bounds = array<i64: 1, 1>, scalar_prefetch = 0 : i64, scratch_operands = 0 : i64, tpu.core_type = #tpu.core_type<tc>, window_params = [{transform_indices = @transform_0, window_bounds = array<i64: 32, 144>}, {transform_indices = @transform_1, window_bounds = array<i64: 144, 128>}, {transform_indices = @transform_2, window_bounds = array<i64: 1, 128>}, {transform_indices = @transform_3, window_bounds = array<i64: 32, 128>}]} {
    %c0 = arith.constant 0 : index
    %c0_0 = arith.constant 0 : index
    %0 = vector.load %arg2[%c0, %c0_0] : memref<32x144xbf16, #tpu.memory_space<vmem>>, vector<32x144xbf16>
    %c0_1 = arith.constant 0 : index
    %c0_2 = arith.constant 0 : index
    %1 = vector.load %arg3[%c0_1, %c0_2] : memref<144x128xbf16, #tpu.memory_space<vmem>>, vector<144x128xbf16>
    %cst = arith.constant dense<0.000000e+00> : vector<32x128xf32>
    %2 = tpu.matmul %0, %1, %cst {dimension_numbers = #tpu.dot_dimension_numbers<[1], [0], [0], [1], [0, 0, 1, 1], [], []>} : vector<32x144xbf16>, vector<144x128xbf16>, vector<32x128xf32> -> vector<32x128xf32>
    %c0_3 = arith.constant 0 : index
    %c0_4 = arith.constant 0 : index
    %3 = vector.load %arg4[%c0_3, %c0_4] : memref<1x128xf32, #tpu.memory_space<vmem>>, vector<1x128xf32>
    %4 = vector.broadcast %3 : vector<1x128xf32> to vector<32x128xf32>
    %5 = arith.addf %2, %4 : vector<32x128xf32>
    %cst_5 = arith.constant 0.000000e+00 : f32
    %6 = vector.broadcast %cst_5 : f32 to vector<32x128xf32>
    %7 = arith.cmpf oge, %5, %6 : vector<32x128xf32>
    %cst_6 = arith.constant 2.000000e-01 : f32
    %8 = vector.broadcast %cst_6 : f32 to vector<32x128xf32>
    %9 = arith.mulf %8, %5 : vector<32x128xf32>
    %10 = arith.select %7, %5, %9 : vector<32x128xi1>, vector<32x128xf32>
    %c0_7 = arith.constant 0 : index
    %c0_8 = arith.constant 0 : index
    %11 = vector.load %arg5[%c0_7, %c0_8] : memref<32x128xf32, #tpu.memory_space<vmem>>, vector<32x128xf32>
    tpu.vector_store %arg5[%c0_7, %c0_8], %10 {strides = array<i32>} : memref<32x128xf32, #tpu.memory_space<vmem>>, vector<32x128xf32>,
    return
  }
  func.func @transform_0(%arg0: i32, %arg1: i32) -> (i32, i32) {
    %c0_i32 = arith.constant 0 : i32
    %c0_i32_0 = arith.constant 0 : i32
    return %arg0, %c0_i32 : i32, i32
  }
  func.func @transform_1(%arg0: i32, %arg1: i32) -> (i32, i32) {
    %c0_i32 = arith.constant 0 : i32
    %c0_i32_0 = arith.constant 0 : i32
    return %c0_i32, %arg1 : i32, i32
  }
  func.func @transform_2(%arg0: i32, %arg1: i32) -> (i32, i32) {
    %c0_i32 = arith.constant 0 : i32
    %c0_i32_0 = arith.constant 0 : i32
    return %c0_i32, %arg1 : i32, i32
  }
  func.func @transform_3(%arg0: i32, %arg1: i32) -> (i32, i32) {
    %c0_i32 = arith.constant 0 : i32
    return %arg0, %arg1 : i32, i32
  }
}

</mosaic_0001>

<bundles_post_ra>
// kernel: _lambda_.3
= control target key start
LH: loop header
LB: loop body
LE: loop exit
PB: predicated region body
PF: predicated region fallthrough
CT: control target
= control target key end

     0   :  { %s697_s12 = smov 0   ;;  %s699_s13 = smov 0   ;;  %s749_s0 = inlined_call_operand.vmem [shape: bf16[128,36], index: 0, kind: input, shape index: {}]   ;;  %s750_s1 = inlined_call_operand.vmem [shape: bf16[36,128], index: 1, kind: input, shape index: {}]   ;;  %s751_s2 = inlined_call_operand.vmem [shape: f32[1,128], index: 2, kind: input, shape index: {}]   ;;  %s752_s3 = inlined_call_operand.vmem [shape: bf16[128,128], index: 3, kind: output, shape index: {}]  }
   0x1   :  { %s701_s14 = smov 0  }
   0x2 LB: > { %s25_s15 = sadd.s32 1, %s671_s13  ;;  %p535_p0 = scmp.ge.s32.totalorder %s675_s14, 1  ;;  %s675_s14 = sphi %s701_s14, %s13_s14   ;;  %s671_s13 = sphi %s699_s13, %s754_s13   ;;  %s667_s12 = sphi %s697_s12, %s753_s12  }
   0x3   : > { %p27_p1 = scmp.ge.s32.totalorder %s25_s15, 2  ;;  %p169_p2 = scmp.lt.s32.totalorder %s675_s14, 3 }
   0x5   : > { %s756_s15 = smov (%p27_p1, %s25_s15), 0  ;;  %p170_p3 = pnand %p535_p0, %p169_p2 }
   0x6   : > { %s536_s20 = sshll.u32 (!%p170_p3), %s667_s12, 3 }
   0x7   : > { %173 = sbr.rel (%p170_p3) target bundleno = 234 (0xea), region = 32  ;;  %p204_p4 = scmp.lt.s32.totalorder (!%p170_p3), %s536_s20, 15 }
   0xc   : > { %v646_v0 = vld [vmem:[%s750_s1 + $0x10] ss:$0 sps:$4 sm:$0x33]   ;;  %vm294_vm0 = vcmask 1041408   ;;  %v647_v1 = vld [vmem:[%s750_s1 + $0x8] sm:$0xff]   ;;  %v648_v3 = vld [vmem:[%s750_s1] sm:$0xff]  }
   0xd   : > { %620 = vmatprep.subr.msk.bf16.mxu0 %vm294_vm0, %v646_v0  ;;  %621 = vmatprep.subr.msk.bf16.mxu1 %vm294_vm0, %v646_v0  ;;  %v296_v2 = vsel %vm294_vm0, %v646_v0, 0  ;;  %s758_s20 = smov (!%p204_p4, %s536_s20), 15  ;;  %vm281_vm1 = vcmask 293888   ;;  %v540_v8 = vld [vmem:[%s751_s2] ss:$0 sm:$0xff] }
   0xe   : > { %601 = vmatpush3.bf16.msra.mxu0 %v296_v2  ;;  %617 = vmatpush3.bf16.msra.mxu1 %v296_v2  ;;  %s537_s23 = sshll.u32 %s758_s20, 2 }
   0xf   : > { %602 = vmatprep.subr.bf16.mxu0 %v647_v1  ;;  %615 = vmatprep.subr.bf16.mxu1 %v647_v1  ;;  %s207_s26 = scalar_lea.vmem %s749_s0, %s537_s23  ;;  %s223_s4 = scalar_lea.vmem %s752_s3, %s537_s23 }
  0x10   : > { %v649_v4 = vld [vmem:[%s207_s26] sm:$0xff]   ;;  %v650_v5 = vld [vmem:[%s207_s26 + $0x10] sm:$0xff]   ;;  %v651_v6 = vld [vmem:[%s207_s26 + $0x8] sm:$0xff]  }
  0x11   : > { %606 = vmatprep.mubr.msk.bf16.mxu0 %vm281_vm1, %v649_v4  ;;  %610 = vmatprep.mubr.msk.bf16.mxu1 %vm281_vm1, %v650_v5  ;;  %v652_v7 = vld [vmem:[%s207_s26 + $0x18] sm:$0xff]  }
  0x12   : > { %603 = vmatpush3.bf16.msra.mxu0 %v647_v1  ;;  %618 = vmatpush3.bf16.msra.mxu1 %v647_v1 }
  0x13   : > { %604 = vmatprep.subr.bf16.mxu0 %v648_v3  ;;  %616 = vmatprep.subr.bf16.mxu1 %v648_v3 }
  0x16   : > { %605 = vmatpush3.bf16.msra.mxu0 %v648_v3  ;;  %619 = vmatpush3.bf16.msra.mxu1 %v648_v3 }
  0x19   : > { %607 = vmatmul.mubr.msk.bf16.vlgmr.msra.gmra.mxu0 %vm281_vm1, %v651_v6  ;;  %611 = vmatmul.mubr.msk.bf16.vlgmr.msra.gmra.mxu1 %vm281_vm1, %v652_v7 }
  0xd9   : > { %v608_v9 = vpop.f32.mrf.mxu0  ;;  %v612_v10 = vpop.f32.mrf.mxu1 }
  0xda   : > { %v341_v11 = vadd.f32 %v608_v9, %v540_v8  ;;  %v357_v12 = vadd.f32 %v612_v10, %v540_v8 }
  0xdb   : > { %v332_v13 = vpop.f32.mrf.mxu0  ;;  %v348_v14 = vpop.f32.mrf.mxu1 }
  0xdc   : > { %vm365_vm2 = vcmp.ge.f32.partialorder %v341_v11, 0.0  ;;  %v373_v15 = vmul.f32 0.2, %v341_v11  ;;  %vm369_vm3 = vcmp.ge.f32.partialorder %v357_v12, 0.0  ;;  %v377_v16 = vmul.f32 0.2, %v357_v12 }
  0xdd   : > { %v333_v17 = vadd.f32 %v540_v8, %v332_v13  ;;  %v609_v18 = vpop.f32.mrf.mxu0  ;;  %v613_v19 = vpop.f32.mrf.mxu1  ;;  %v349_v20 = vadd.f32 %v540_v8, %v348_v14 }
  0xde   : > { %v344_v21 = vadd.f32 %v609_v18, %v540_v8  ;;  %v360_v22 = vadd.f32 %v613_v19, %v540_v8  ;;  %v381_v23 = vsel %vm365_vm2, %v341_v11, %v373_v15  ;;  %v385_v24 = vsel %vm369_vm3, %v357_v12, %v377_v16 }
  0xdf   : > { %v335_v25 = vpop.f32.mrf.mxu0  ;;  %v351_v26 = vpop.f32.mrf.mxu1  ;;  %vm363_vm6 = vcmp.ge.f32.partialorder %v333_v17, 0.0  ;;  %v371_v29 = vmul.f32 0.2, %v333_v17  ;;  %vm367_vm7 = vcmp.ge.f32.partialorder %v349_v20, 0.0  ;;  %v375_v32 = vmul.f32 0.2, %v349_v20 }
  0xe0   : > { %vm366_vm4 = vcmp.ge.f32.partialorder %v344_v21, 0.0  ;;  %v374_v27 = vmul.f32 0.2, %v344_v21  ;;  %vm370_vm5 = vcmp.ge.f32.partialorder %v360_v22, 0.0  ;;  %v378_v28 = vmul.f32 0.2, %v360_v22 }
  0xe1   : > { %v336_v30 = vadd.f32 %v540_v8, %v335_v25  ;;  %v352_v31 = vadd.f32 %v540_v8, %v351_v26  ;;  %v379_v39 = vsel %vm363_vm6, %v333_v17, %v371_v29  ;;  %v383_v41 = vsel %vm367_vm7, %v349_v20, %v375_v32 }
  0xe2   : > { %v382_v33 = vsel %vm366_vm4, %v344_v21, %v374_v27  ;;  %v386_v34 = vsel %vm370_vm5, %v360_v22, %v378_v28 }
  0xe3   : > { %v578_v35 = vpack.c.bf16 %v382_v33, %v381_v23  ;;  %v588_v36 = vpack.c.bf16 %v386_v34, %v385_v24  ;;  %vm364_vm8 = vcmp.ge.f32.partialorder %v336_v30, 0.0  ;;  %v372_v37 = vmul.f32 0.2, %v336_v30 }
  0xe4   : > { %vm368_vm9 = vcmp.ge.f32.partialorder %v352_v31, 0.0  ;;  %v376_v38 = vmul.f32 0.2, %v352_v31 }
  0xe5   : > { %590 = vst [vmem:[%s223_s4 + $0x8] sm:$0xff] %v578_v35   ;;  %592 = vst [vmem:[%s223_s4 + $0x18] sm:$0xff] %v588_v36   ;;  %v380_v40 = vsel %vm364_vm8, %v336_v30, %v372_v37 }
  0xe6   : > { %v573_v42 = vpack.c.bf16 %v380_v40, %v379_v39  ;;  %v384_v43 = vsel %vm368_vm9, %v352_v31, %v376_v38 }
  0xe7   : > { %v583_v44 = vpack.c.bf16 %v384_v43, %v383_v41 }
  0xe8   : > { %574 = vst [vmem:[%s223_s4] sm:$0xff] %v573_v42  }
  0xe9   : > { %591 = vst [vmem:[%s223_s4 + $0x10] sm:$0xff] %v583_v44  }
  0xea PF: > { %s13_s14 = sadd.s32 1, %s675_s14   ;;  %s753_s12 = smov %s671_s13 }
  0xeb   : > { %p10_p5 = scmp.ge.s32.totalorder %s13_s14, 4   ;;  %s754_s13 = smov %s756_s15 }
  0xed   :  { %12 = sbr.rel (!%p10_p5) target bundleno = 2 (0x2), region = 68 }

// kernel: _lambda_.4
= control target key start
LH: loop header
LB: loop body
LE: loop exit
PB: predicated region body
PF: predicated region fallthrough
CT: control target
= control target key end

     0   :  { %vm79_vm0 = vcmask 1043456   ;;  %vm72_vm1 = vcmask 588800   ;;  %s276_s1 = inlined_call_operand.vmem [shape: bf16[72,128], index: 1, kind: input, shape index: {}]   ;;  %s277_s0 = inlined_call_operand.vmem [shape: bf16[32,72], index: 0, kind: input, shape index: {}]   ;;  %s278_s2 = inlined_call_operand.vmem [shape: f32[1,128], index: 2, kind: input, shape index: {}]   ;;  %s279_s3 = inlined_call_operand.vmem [shape: bf16[32,128], index: 3, kind: output, shape index: {}]  }
   0x1   :  { %v219_v0 = vld [vmem:[%s276_s1 + $0x20] ss:$0 sps:$4 sm:$0xff]   ;;  %v220_v1 = vld [vmem:[%s276_s1 + $0x18] sm:$0xff]   ;;  %v221_v3 = vld [vmem:[%s276_s1 + $0x10] sm:$0xff]  }
   0x2   :  { %218 = vmatprep.subr.msk.bf16.mxu0 %vm79_vm0, %v219_v0  ;;  %v81_v2 = vsel %vm79_vm0, %v219_v0, 0  ;;  %v224_v4 = vld [vmem:[%s277_s0] sm:$0xff]   ;;  %v222_v5 = vld [vmem:[%s276_s1 + $0x8] sm:$0xff]  }
   0x3   :  { %205 = vmatpush3.bf16.msra.mxu0 %v81_v2  ;;  %214 = vmatprep.mubr.msk.bf16.mxu0 %vm72_vm1, %v224_v4  ;;  %v223_v6 = vld [vmem:[%s276_s1] sm:$0xff]   ;;  %v225_v7 = vld [vmem:[%s277_s0 + $0x8] sm:$0xff]  }
   0x4   :  { %206 = vmatprep.subr.bf16.mxu0 %v220_v1  ;;  %v168_v8 = vld [vmem:[%s278_s2] ss:$0 sm:$0xff] }
   0x7   :  { %207 = vmatpush3.bf16.msra.mxu0 %v220_v1 }
   0x8   :  { %208 = vmatprep.subr.bf16.mxu0 %v221_v3 }
   0xb   :  { %209 = vmatpush3.bf16.msra.mxu0 %v221_v3 }
   0xc   :  { %210 = vmatprep.subr.bf16.mxu0 %v222_v5 }
   0xf   :  { %211 = vmatpush3.bf16.msra.mxu0 %v222_v5 }
  0x10   :  { %212 = vmatprep.subr.bf16.mxu0 %v223_v6 }
  0x13   :  { %213 = vmatpush3.bf16.msra.mxu0 %v223_v6 }
  0x16   :  { %215 = vmatmul.mubr.msk.bf16.vlgmr.msra.gmra.mxu0 %vm72_vm1, %v225_v7 }
  0xd6   :  { %v216_v9 = vpop.f32.mrf.mxu0 }
  0xd7   :  { %v126_v10 = vadd.f32 %v216_v9, %v168_v8 }
  0xd8   :  { %v117_v11 = vpop.f32.mrf.mxu0 }
  0xd9   :  { %v118_v12 = vadd.f32 %v168_v8, %v117_v11  ;;  %v138_v14 = vmul.f32 0.2, %v126_v10  ;;  %vm134_vm2 = vcmp.ge.f32.partialorder %v126_v10, 0.0 }
  0xda   :  { %v217_v13 = vpop.f32.mrf.mxu0 }
  0xdb   :  { %v129_v15 = vadd.f32 %v217_v13, %v168_v8  ;;  %v136_v17 = vmul.f32 0.2, %v118_v12  ;;  %vm132_vm4 = vcmp.ge.f32.partialorder %v118_v12, 0.0  ;;  %v142_v20 = vsel %vm134_vm2, %v126_v10, %v138_v14 }
  0xdc   :  { %v120_v16 = vpop.f32.mrf.mxu0 }
  0xdd   :  { %vm135_vm3 = vcmp.ge.f32.partialorder %v129_v15, 0.0  ;;  %v139_v18 = vmul.f32 0.2, %v129_v15  ;;  %v121_v19 = vadd.f32 %v168_v8, %v120_v16  ;;  %v140_v24 = vsel %vm132_vm4, %v118_v12, %v136_v17 }
  0xdf   :  { %v143_v21 = vsel %vm135_vm3, %v129_v15, %v139_v18  ;;  %vm133_vm5 = vcmp.ge.f32.partialorder %v121_v19, 0.0  ;;  %v137_v22 = vmul.f32 0.2, %v121_v19 }
  0xe0   :  { %v194_v23 = vpack.c.bf16 %v143_v21, %v142_v20 }
  0xe1   :  { %v141_v25 = vsel %vm133_vm5, %v121_v19, %v137_v22 }
  0xe2   :  { %196 = vst [vmem:[%s279_s3 + $0x8] sm:$0xff] %v194_v23   ;;  %v189_v26 = vpack.c.bf16 %v141_v25, %v140_v24 }
  0xe4   :  { %190 = vst [vmem:[%s279_s3] sm:$0xff] %v189_v26  }

// kernel: _lambda_.5
= control target key start
LH: loop header
LB: loop body
LE: loop exit
PB: predicated region body
PF: predicated region fallthrough
CT: control target
= control target key end

     0   :  { %v242_v0 = vmov 0   ;;  %vm116_vm0 = vcmask 130048   ;;  %s317_s1 = inlined_call_operand.vmem [shape: bf16[144,128], index: 1, kind: input, shape index: {}]   ;;  %s318_s0 = inlined_call_operand.vmem [shape: bf16[32,144], index: 0, kind: input, shape index: {}]   ;;  %s319_s2 = inlined_call_operand.vmem [shape: f32[1,128], index: 2, kind: input, shape index: {}]   ;;  %s320_s3 = inlined_call_operand.vmem [shape: f32[32,128], index: 3, kind: output, shape index: {}]  }
   0x1   :  { %123 = vmatprep.subr.bf16.mxu0 %v242_v0  ;;  %208 = vmatprep.subr.bf16.mxu1 %v242_v0  ;;  %v227_v1 = vld [vmem:[%s317_s1 + $0x38] sm:$0xff]   ;;  %v228_v2 = vld [vmem:[%s317_s1 + $0x30] sm:$0xff]   ;;  %v229_v3 = vld [vmem:[%s317_s1 + $0x28] sm:$0xff]  }
   0x2   :  { %124 = vmatpush1.bf16.msra.mxu0 %v227_v1  ;;  %217 = vmatpush1.bf16.msra.mxu1 %v227_v1  ;;  %v230_v4 = vld [vmem:[%s317_s1 + $0x20] sm:$0xff]   ;;  %v241_v6 = vld [vmem:[%s318_s0 + $0x14] ss:$8 sps:$4 sm:$0xff]   ;;  %v233_v9 = vld [vmem:[%s317_s1 + $0x8] sm:$0xff]  }
   0x3   :  { %125 = vmatprep.subr.bf16.mxu0 %v242_v0  ;;  %209 = vmatprep.subr.bf16.mxu1 %v242_v0  ;;  %v238_v5 = vld [vmem:[%s318_s0 + $0x4] ss:$8 sps:$4 sm:$0xff]   ;;  %v231_v7 = vld [vmem:[%s317_s1 + $0x18] sm:$0xff]   ;;  %v232_v8 = vld [vmem:[%s317_s1 + $0x10] sm:$0xff]  }
   0x4   :  { %206 = vmatprep.mubr.msk.bf16.mxu0 %vm116_vm0, %v238_v5  ;;  %207 = vmatprep.mubr.msk.bf16.mxu1 %vm116_vm0, %v241_v6  ;;  %v234_v10 = vld [vmem:[%s317_s1] sm:$0xff]   ;;  %v239_v13 = vld [vmem:[%s318_s0 + $0x10] ss:$8 sps:$4 sm:$0xff]  }
   0x5   :  { %v235_v11 = vld [vmem:[%s317_s1 + $0x40] sm:$0xff]  }
   0x6   :  { %126 = vmatpush1.bf16.msra.mxu0 %v228_v2  ;;  %218 = vmatpush1.bf16.msra.mxu1 %v228_v2  ;;  %v236_v12 = vld [vmem:[%s318_s0] ss:$8 sps:$4 sm:$0xff]  }
   0x7   :  { %127 = vmatprep.subr.bf16.mxu0 %v242_v0  ;;  %210 = vmatprep.subr.bf16.mxu1 %v242_v0  ;;  %v192_v14 = vld [vmem:[%s319_s2] ss:$0 sm:$0xff] }
   0xa   :  { %128 = vmatpush1.bf16.msra.mxu0 %v229_v3  ;;  %219 = vmatpush1.bf16.msra.mxu1 %v229_v3 }
   0xb   :  { %129 = vmatprep.subr.bf16.mxu0 %v242_v0  ;;  %211 = vmatprep.subr.bf16.mxu1 %v242_v0 }
   0xe   :  { %130 = vmatpush1.bf16.msra.mxu0 %v230_v4  ;;  %220 = vmatpush1.bf16.msra.mxu1 %v230_v4 }
   0xf   :  { %131 = vmatprep.subr.bf16.mxu0 %v242_v0  ;;  %212 = vmatprep.subr.bf16.mxu1 %v242_v0 }
  0x12   :  { %132 = vmatpush1.bf16.msra.mxu0 %v231_v7  ;;  %221 = vmatpush1.bf16.msra.mxu1 %v231_v7 }
  0x13   :  { %133 = vmatprep.subr.bf16.mxu0 %v242_v0  ;;  %213 = vmatprep.subr.bf16.mxu1 %v242_v0 }
  0x16   :  { %134 = vmatpush1.bf16.msra.mxu0 %v232_v8  ;;  %222 = vmatpush1.bf16.msra.mxu1 %v232_v8 }
  0x17   :  { %135 = vmatprep.subr.bf16.mxu0 %v242_v0  ;;  %214 = vmatprep.subr.bf16.mxu1 %v242_v0 }
  0x1a   :  { %136 = vmatpush1.bf16.msra.mxu0 %v233_v9  ;;  %223 = vmatpush1.bf16.msra.mxu1 %v233_v9 }
  0x1b   :  { %137 = vmatprep.subr.bf16.mxu0 %v242_v0  ;;  %215 = vmatprep.subr.bf16.mxu1 %v242_v0 }
  0x1e   :  { %138 = vmatpush1.bf16.msra.mxu0 %v234_v10  ;;  %224 = vmatpush1.bf16.msra.mxu1 %v234_v10 }
  0x1f   :  { %153 = vmatprep.subr.bf16.mxu0 %v242_v0  ;;  %216 = vmatprep.subr.bf16.mxu1 %v242_v0 }
  0x22   :  { %154 = vmatpush2.bf16.msra.mxu0 %v235_v11  ;;  %225 = vmatpush2.bf16.msra.mxu1 %v235_v11 }
  0x25   :  { %156 = vmatmul.mubr.bf16.vlgmr.msra.gmra.mxu0 %v236_v12  ;;  %164 = vmatmul.mubr.bf16.vlgmr.msra.gmra.mxu1 %v239_v13 }
  0xe5   :  { %v157_v15 = vpop.f32.mrf.mxu0  ;;  %v165_v16 = vpop.f32.mrf.mxu1 }
  0xe6   :  { %v158_v17 = vadd.f32 %v192_v14, %v157_v15  ;;  %v166_v18 = vadd.f32 %v192_v14, %v165_v16 }
  0xe7   :  { %v159_v19 = vpop.f32.mrf.mxu0  ;;  %v167_v20 = vpop.f32.mrf.mxu1 }
  0xe8   :  { %vm172_vm1 = vcmp.ge.f32.partialorder %v158_v17, 0.0  ;;  %v176_v21 = vmul.f32 0.2, %v158_v17  ;;  %vm174_vm2 = vcmp.ge.f32.partialorder %v166_v18, 0.0  ;;  %v178_v22 = vmul.f32 0.2, %v166_v18 }
  0xe9   :  { %v160_v23 = vpop.f32.mrf.mxu0  ;;  %v168_v24 = vpop.f32.mrf.mxu1 }
  0xea   :  { %v180_v25 = vsel %vm172_vm1, %v158_v17, %v176_v21  ;;  %v182_v26 = vsel %vm174_vm2, %v166_v18, %v178_v22  ;;  %v161_v27 = vadd.f32 %v192_v14, %v160_v23  ;;  %v169_v28 = vadd.f32 %v192_v14, %v168_v24 }
  0xeb   :  { %184 = vst [vmem:[%s320_s3] sm:$0xff] %v180_v25  ;;  %186 = vst [vmem:[%s320_s3 + $0x10] sm:$0xff] %v182_v26  ;;  %v162_v29 = vpop.f32.mrf.mxu0  ;;  %v170_v30 = vpop.f32.mrf.mxu1 }
  0xec   :  { %vm173_vm3 = vcmp.ge.f32.partialorder %v161_v27, 0.0  ;;  %v177_v31 = vmul.f32 0.2, %v161_v27  ;;  %vm175_vm4 = vcmp.ge.f32.partialorder %v169_v28, 0.0  ;;  %v179_v32 = vmul.f32 0.2, %v169_v28 }
  0xee   :  { %v181_v33 = vsel %vm173_vm3, %v161_v27, %v177_v31  ;;  %v183_v34 = vsel %vm175_vm4, %v169_v28, %v179_v32 }
  0xef   :  { %185 = vst [vmem:[%s320_s3 + $0x8] sm:$0xff] %v181_v33  ;;  %187 = vst [vmem:[%s320_s3 + $0x18] sm:$0xff] %v183_v34 }

</bundles_post_ra>
